<compile_context>
chip_gen: v6e
topology: v6e:2x2x1
jax: 0.10.0
libtpu: 0.0.40
codegen_flags: <defaults>
</compile_context>

<pallas_src>
import jax
import jax.numpy as jnp
from jax.experimental import pallas as pl
from jax.experimental.pallas import tpu as pltpu

_BN_EPS = 1e-5


# ---------------------------------------------------------------------------
# Hardware sizing helpers
# ---------------------------------------------------------------------------
def _tpu_vmem_bytes():
    """Physical VMEM per core (128 MiB v5e/v6e, 64 MiB v7x); safe fallback."""
    try:
        cap = getattr(pltpu.get_tpu_info(), "vmem_capacity_bytes", None)
        if cap:
            return int(cap)
    except Exception:
        pass
    return 64 * 1024 * 1024


def _choose_tile_m(m_total, c_in, cout, vmem_cap):
    """Pixel-columns per tile for the tiled path, sized from the per-step
    footprint (bf16 blocks double-buffered, worst-case sweep: 3*cout input
    channels + cout output channels) against ~60% of this chip's VMEM."""
    max_in_ch = max(c_in, 3 * cout)
    per_col = 2 * 2 * (max_in_ch + cout)      # bf16 in/out blocks, 2 buffers each
    per_col += 4 * 2 * cout                   # f32 matmul accumulators (y, yn)
    budget = int(0.6 * vmem_cap)
    t = budget // max(per_col, 1)
    t = max(512, min(int(t), 8192))
    t = (t // 512) * 512                      # keep stores lane-aligned / unmasked
    t = min(t, ((m_total + 511) // 512) * 512)
    return t


# ---------------------------------------------------------------------------
# Fast path: whole DenseBlock in a single VMEM-resident kernel (f32 throughout)
# ---------------------------------------------------------------------------
def _make_fused_block_kernel(cout, m_total):
    inv_m = 1.0 / float(m_total)

    def kernel(x_ref, w1_ref, w2_ref, w3_ref, w4_ref,
               gamma_ref, beta_ref, alpha_ref, out_ref):
        def bn_prelu(y, layer):
            # y: (cout, M) f32 pre-BN activations of one layer.
            s = jnp.sum(y, axis=1, keepdims=True)                    # (cout, 1)
            ss = jnp.sum(y * y, axis=1, keepdims=True)               # (cout, 1)
            mean = s * inv_m
            var = jnp.maximum(ss * inv_m - mean * mean, 0.0)         # biased var
            scale = gamma_ref[:, layer:layer + 1] * jax.lax.rsqrt(var + _BN_EPS)
            shift = beta_ref[:, layer:layer + 1] - mean * scale
            z = y * scale + shift
            a = alpha_ref[layer]                                     # PReLU slope
            return jnp.where(z > 0.0, z, a * z)

        x = x_ref[...]                                               # (Cin, M)
        o1 = bn_prelu(jnp.dot(w1_ref[...], x,
                              preferred_element_type=jnp.float32), 0)
        o2 = bn_prelu(jnp.dot(w2_ref[...], o1,
                              preferred_element_type=jnp.float32), 1)
        # layer3 input is concat(o1, o2) along channels -> split-K dots.
        w3 = w3_ref[...]
        y3 = (jnp.dot(w3[:, :cout], o1, preferred_element_type=jnp.float32) +
              jnp.dot(w3[:, cout:], o2, preferred_element_type=jnp.float32))
        o4 = bn_prelu(y3, 2)
        # layer4 input is concat(o1, o2, o4).
        w4 = w4_ref[...]
        y4 = (jnp.dot(w4[:, :cout], o1, preferred_element_type=jnp.float32) +
              jnp.dot(w4[:, cout:2 * cout], o2,
                      preferred_element_type=jnp.float32) +
              jnp.dot(w4[:, 2 * cout:], o4, preferred_element_type=jnp.float32))
        out_ref[...] = bn_prelu(y4, 3).astype(out_ref.dtype)

    return kernel


def _fused_block(x_cm, w_t, gammas, betas, alphas, cout, vmem_limit):
    c_in, m_total = x_cm.shape

    def full_spec(shape):
        return pl.BlockSpec(shape, lambda i: (0, 0))

    kernel = _make_fused_block_kernel(cout, m_total)
    return pl.pallas_call(
        kernel,
        grid=(1,),
        in_specs=[
            full_spec((c_in, m_total)),
            full_spec((cout, c_in)),
            full_spec((cout, cout)),
            full_spec((cout, 2 * cout)),
            full_spec((cout, 3 * cout)),
            full_spec((cout, 4)),
            full_spec((cout, 4)),
            pl.BlockSpec(memory_space=pltpu.SMEM),        # 4 PReLU slopes
        ],
        out_specs=full_spec((cout, m_total)),
        out_shape=jax.ShapeDtypeStruct((cout, m_total), jnp.float32),
        compiler_params=pltpu.CompilerParams(
            dimension_semantics=("arbitrary",),
            vmem_limit_bytes=vmem_limit),
    )(x_cm, w_t[0], w_t[1], w_t[2], w_t[3], gammas, betas, alphas)


# ---------------------------------------------------------------------------
# Tiled path (large M): 5 M-sweeps, per-tile batch-stat partials, bf16 activations
# ---------------------------------------------------------------------------
def _split_dot(w_ref, parts, part_ch):
    """W @ concat(parts) without materializing the concat, unless K is large
    enough (>=256) that a single full-K MXU contraction wins (v6e/v7x MXU)."""
    if len(parts) > 1 and sum(part_ch) >= 256:
        xk = jnp.concatenate(parts, axis=0)
        return jnp.dot(w_ref[...], xk, preferred_element_type=jnp.float32)
    y = None
    off = 0
    for p, c in zip(parts, part_ch):
        t = jnp.dot(w_ref[:, off:off + c], p, preferred_element_type=jnp.float32)
        y = t if y is None else y + t
        off += c
    return y


def _make_sweep_kernel(n_parts, part_ch, has_apply, has_next,
                       include_parts_in_next, cout, tile_m, m_total, m_pad):
    need_mask = (m_pad != m_total)     # static: only emitted if M was padded

    def kernel(*refs):
        i = 0
        part_refs = refs[i:i + n_parts]; i += n_parts
        if has_apply:
            w_cur_ref, scale_ref, shift_ref, alpha_ref = refs[i:i + 4]; i += 4
        if has_next:
            w_next_ref = refs[i]; i += 1
        if has_apply:
            out_ref = refs[i]; i += 1
        if has_next:
            stats_ref = refs[i]; i += 1

        m = pl.program_id(0)
        parts = [r[...] for r in part_refs]             # bf16 (C_i, tile_m)

        out_b = None
        if has_apply:
            # 1x1 conv over the (virtually) concatenated input, BN folded into a
            # per-channel scale/shift, PReLU -- all in f32, M on the lane axis.
            y = _split_dot(w_cur_ref, parts, part_ch)
            y = y * scale_ref[...] + shift_ref[...]
            a = alpha_ref[0]
            y = jnp.where(y > 0.0, y, a * y)
            if need_mask:
                # Zero the padded pixel columns.  Keeping every stored activation
                # exactly zero in the pad region means no batch-stat reduction
                # (this sweep or any later one) ever needs a mask.
                col = (jax.lax.broadcasted_iota(jnp.int32, (1, tile_m), 1)
                       + m * tile_m)
                y = jnp.where(col < m_total, y, 0.0)
            out_b = y.astype(out_ref.dtype)
            out_ref[...] = out_b

        if has_next:
            nxt, nxt_ch = [], []
            if include_parts_in_next:
                nxt += list(parts); nxt_ch += list(part_ch)
            if has_apply:
                nxt.append(out_b); nxt_ch.append(cout)
            yn = _split_dot(w_next_ref, nxt, tuple(nxt_ch))
            # Per-tile partial sums / sums-of-squares (reduced in the wrapper);
            # keeps the M grid axis fully parallel (megacore-safe).
            s = jnp.sum(yn, axis=1, keepdims=True)              # (cout, 1)
            ss = jnp.sum(yn * yn, axis=1, keepdims=True)        # (cout, 1)
            stats_ref[:, :, 0:1] = s[None]
            stats_ref[:, :, 1:2] = ss[None]

    return kernel


def _sweep(parts, part_ch, *, w_cur=None, scale=None, shift=None, alpha=None,
           w_next=None, include_parts_in_next=True, tile_m, m_total, m_pad,
           cout, vmem_limit, act_dtype=jnp.bfloat16):
    has_apply = w_cur is not None
    has_next = w_next is not None
    num_tiles = m_pad // tile_m
    grid = (num_tiles,)

    ins, in_specs = [], []
    for p, c in zip(parts, part_ch):
        ins.append(p)
        in_specs.append(pl.BlockSpec((c, tile_m), lambda m: (0, m)))
    if has_apply:
        cin = sum(part_ch)
        ins += [w_cur, scale, shift, alpha]
        in_specs += [
            pl.BlockSpec((cout, cin), lambda m: (0, 0)),
            pl.BlockSpec((cout, 1), lambda m: (0, 0)),
            pl.BlockSpec((cout, 1), lambda m: (0, 0)),
            pl.BlockSpec(memory_space=pltpu.SMEM),       # PReLU slope scalar
        ]
    if has_next:
        ins.append(w_next)
        in_specs.append(pl.BlockSpec((cout, w_next.shape[1]), lambda m: (0, 0)))

    out_shapes, out_specs = [], []
    if has_apply:
        out_shapes.append(jax.ShapeDtypeStruct((cout, m_pad), act_dtype))
        out_specs.append(pl.BlockSpec((cout, tile_m), lambda m: (0, m)))
    if has_next:
        out_shapes.append(jax.ShapeDtypeStruct((num_tiles, cout, 2), jnp.float32))
        out_specs.append(pl.BlockSpec((1, cout, 2), lambda m: (m, 0, 0)))

    kernel = _make_sweep_kernel(len(parts), tuple(part_ch), has_apply, has_next,
                                include_parts_in_next, cout, tile_m, m_total,
                                m_pad)
    return pl.pallas_call(
        kernel,
        grid=grid,
        in_specs=in_specs,
        out_specs=tuple(out_specs),
        out_shape=tuple(out_shapes),
        compiler_params=pltpu.CompilerParams(
            dimension_semantics=("parallel",),   # per-tile stats => no accumulator
            vmem_limit_bytes=vmem_limit),
    )(*ins)


def _bn_affine(stats, gamma, beta, m_total):
    """Reduce per-tile (sum, sum_sq) partials and fold training-mode BatchNorm2d
    (biased batch variance, eps=1e-5) into a per-channel (cout, 1) scale/shift."""
    tot = jnp.sum(stats, axis=0)                       # (cout, 2)
    mean = tot[:, 0] / m_total
    var = jnp.maximum(tot[:, 1] / m_total - mean * mean, 0.0)
    scale = gamma * jax.lax.rsqrt(var + _BN_EPS)
    shift = beta - mean * scale
    return (scale.reshape(-1, 1).astype(jnp.float32),
            shift.reshape(-1, 1).astype(jnp.float32))


# ---------------------------------------------------------------------------
# Parameters & forward
# ---------------------------------------------------------------------------
def init_dense_block_params(key, in_channels, out_channels):
    """Deterministic parameter init mirroring the module's __init__ shapes.

    Conv weights stored as (Cin, Cout) (PyTorch's (Cout, Cin, 1, 1) transposed /
    squeezed).  BN: gamma=1, beta=0.  PReLU: single shared slope = 0.25.
    """
    cins = [in_channels, out_channels, 2 * out_channels, 3 * out_channels]
    params = []
    for cin in cins:
        key, sub = jax.random.split(key)
        bound = 1.0 / jnp.sqrt(jnp.float32(cin))
        w = jax.random.uniform(sub, (cin, out_channels), jnp.float32, -bound, bound)
        params.append(dict(
            w=w,
            gamma=jnp.ones((out_channels,), jnp.float32),
            beta=jnp.zeros((out_channels,), jnp.float32),
            alpha=jnp.float32(0.25),
        ))
    return params


def dense_block_forward(x_nchw, params, *, force_tiled=False, tile_m=None):
    """DenseBlock.forward (training-mode BatchNorm batch statistics).

    Input/output are NCHW like PyTorch; internally the lane-dense (channels,
    pixels) layout is used so M = N*H*W sits on the 128-lane axis of every tile.
    """
    n, c_in, h, w = x_nchw.shape
    cout = params[0]["w"].shape[1]
    m_total = n * h * w

    # Single NCHW -> (C, M) layout change; undone once at the end.
    x_cm = jnp.transpose(x_nchw, (1, 0, 2, 3)).reshape(c_in, m_total)

    w_t = [jnp.transpose(p["w"]) for p in params]                # (cout, cin) f32
    gammas = jnp.stack([p["gamma"] for p in params], axis=1)     # (cout, 4)
    betas = jnp.stack([p["beta"] for p in params], axis=1)       # (cout, 4)
    alphas = jnp.stack([jnp.asarray(p["alpha"], jnp.float32) for p in params])

    vmem_cap = _tpu_vmem_bytes()
    vmem_limit = min(int(0.75 * vmem_cap), 112 * 1024 * 1024)

    # ---- Fast path: everything VMEM-resident, one kernel, f32 throughout ----
    weight_bytes = 4 * sum(int(wi.size) for wi in w_t)
    fused_bytes = 4 * m_total * (2 * c_in + 10 * cout) + weight_bytes
    if not force_tiled and tile_m is None and fused_bytes <= int(0.5 * vmem_cap):
        out_cm = _fused_block(x_cm, w_t, gammas, betas, alphas, cout, vmem_limit)
    else:
        # ---- Tiled path: 5 M-sweeps, bf16 activations crossing HBM ----
        tm = tile_m if tile_m is not None else _choose_tile_m(
            m_total, c_in, cout, vmem_cap)
        tm = max(512, (int(tm) // 512) * 512)
        num_tiles = -(-m_total // tm)
        m_pad = num_tiles * tm
        if m_pad != m_total:
            # Zero padding => padded pixel columns contribute 0 to all batch stats.
            x_cm_p = jnp.pad(x_cm, ((0, 0), (0, m_pad - m_total)))
        else:
            x_cm_p = x_cm
        x_b = x_cm_p.astype(jnp.bfloat16)
        w_b = [wi.astype(jnp.bfloat16) for wi in w_t]
        al = [alphas[l].reshape(1) for l in range(4)]

        kw = dict(tile_m=tm, m_total=m_total, m_pad=m_pad, cout=cout,
                  vmem_limit=vmem_limit)

        # Sweep 0: partial stats of y1 = W1 @ x.
        (st1,) = _sweep([x_b], [c_in], w_next=w_b[0], **kw)
        sc1, sh1 = _bn_affine(st1, params[0]["gamma"], params[0]["beta"], m_total)

        # Sweep 1: out1 = PReLU(BN(W1 @ x)); partial stats of y2 = W2 @ out1.
        out1, st2 = _sweep([x_b], [c_in], w_cur=w_b[0], scale=sc1, shift=sh1,
                           alpha=al[0], w_next=w_b[1],
                           include_parts_in_next=False, **kw)
        sc2, sh2 = _bn_affine(st2, params[1]["gamma"], params[1]["beta"], m_total)

        # Sweep 2: out2 = layer2(out1); stats of y3 = W3 @ [out1; out2].
        out2, st3 = _sweep([out1], [cout], w_cur=w_b[1], scale=sc2, shift=sh2,
                           alpha=al[1], w_next=w_b[2], **kw)
        sc3, sh3 = _bn_affine(st3, params[2]["gamma"], params[2]["beta"], m_total)

        # Sweep 3: out4 = layer3([out1; out2]); stats of y4 = W4 @ [out1; out2; out4].
        out4, st4 = _sweep([out1, out2], [cout, cout], w_cur=w_b[2], scale=sc3,
                           shift=sh3, alpha=al[2], w_next=w_b[3], **kw)
        sc4, sh4 = _bn_affine(st4, params[3]["gamma"], params[3]["beta"], m_total)

        # Sweep 4: final = layer4([out1; out2; out4]).
        (out_f,) = _sweep([out1, out2, out4], [cout, cout, cout], w_cur=w_b[3],
                          scale=sc4, shift=sh4, alpha=al[3], **kw)
        out_cm = out_f[:, :m_total].astype(jnp.float32)

    out = out_cm.reshape(cout, n, h, w)
    return jnp.transpose(out, (1, 0, 2, 3))


# ---------------------------------------------------------------------------
# Pure-JAX reference (for self-check) and demo
# ---------------------------------------------------------------------------
def _reference_forward(x_nchw, params):
    n, c, h, w = x_nchw.shape
    xs = jnp.transpose(x_nchw, (0, 2, 3, 1)).reshape(-1, c)

    def layer(inp, p):
        y = inp @ p["w"]
        mean = jnp.mean(y, axis=0)
        var = jnp.mean((y - mean) ** 2, axis=0)
        yn = (y - mean) * jax.lax.rsqrt(var + _BN_EPS) * p["gamma"] + p["beta"]
        return jnp.where(yn > 0, yn, p["alpha"] * yn)

    o1 = layer(xs, params[0])
    o2 = layer(o1, params[1])
    o4 = layer(jnp.concatenate([o1, o2], axis=1), params[2])
    of = layer(jnp.concatenate([o1, o2, o4], axis=1), params[3])
    cout = params[0]["w"].shape[1]
    return jnp.transpose(of.reshape(n, h, w, cout), (0, 3, 1, 2))


if __name__ == "__main__":
    key = jax.random.PRNGKey(0)
    k_x, k_p, k_x2 = jax.random.split(key, 3)

    batch, in_channels, out_channels, spatial = 2, 4, 8, 16
    x = jax.random.normal(k_x, (batch, in_channels, spatial, spatial), jnp.float32)
    params = init_dense_block_params(k_p, in_channels, out_channels)

    # Small problem: single fused, fully VMEM-resident kernel.
    fwd = jax.jit(dense_block_forward)
    y = jax.block_until_ready(fwd(x, params))
    y_ref = _reference_forward(x, params)
    assert y.shape == (batch, out_channels, spatial, spatial)
    assert bool(jnp.all(jnp.isfinite(y)))
    assert bool(jnp.allclose(y, y_ref, atol=5e-2, rtol=5e-2))

    # Larger problem forced through the tiled multi-sweep path (bf16 activations,
    # per-tile batch-stat partials, M padded up to a multiple of the tile).
    x2 = jax.random.normal(k_x2, (batch, in_channels, 48, 48), jnp.float32)
    fwd_tiled = jax.jit(
        lambda a, p: dense_block_forward(a, p, force_tiled=True, tile_m=1024))
    y2 = jax.block_until_ready(fwd_tiled(x2, params))
    y2_ref = _reference_forward(x2, params)
    assert y2.shape == (batch, out_channels, 48, 48)
    assert bool(jnp.all(jnp.isfinite(y2)))
    assert bool(jnp.allclose(y2, y2_ref, atol=2e-1, rtol=1e-1))

    print("KERNEL_OK")
</pallas_src>

<mosaic_0001>
module attributes {stable_mosaic.version = 11 : i64} {
  func.func @kernel(%arg0: i32, %arg1: memref<4x512xf32, #tpu.memory_space<vmem>>, %arg2: memref<8x4xf32, #tpu.memory_space<vmem>>, %arg3: memref<8x8xf32, #tpu.memory_space<vmem>>, %arg4: memref<8x16xf32, #tpu.memory_space<vmem>>, %arg5: memref<8x24xf32, #tpu.memory_space<vmem>>, %arg6: memref<8x4xf32, #tpu.memory_space<vmem>>, %arg7: memref<8x4xf32, #tpu.memory_space<vmem>>, %arg8: memref<4xf32, #tpu.memory_space<smem>>, %arg9: memref<8x512xf32, #tpu.memory_space<vmem>>) attributes {dimension_semantics = [#tpu.dimension_semantics<arbitrary>], iteration_bounds = array<i64: 1>, scalar_prefetch = 0 : i64, scratch_operands = 0 : i64, tpu.core_type = #tpu.core_type<tc>, window_params = [{pipeline_mode = #tpu.pipeline_mode<synchronous>, transform_indices = @transform_0, window_bounds = array<i64: 4, 512>}, {pipeline_mode = #tpu.pipeline_mode<synchronous>, transform_indices = @transform_1, window_bounds = array<i64: 8, 4>}, {pipeline_mode = #tpu.pipeline_mode<synchronous>, transform_indices = @transform_2, window_bounds = array<i64: 8, 8>}, {pipeline_mode = #tpu.pipeline_mode<synchronous>, transform_indices = @transform_3, window_bounds = array<i64: 8, 16>}, {pipeline_mode = #tpu.pipeline_mode<synchronous>, transform_indices = @transform_4, window_bounds = array<i64: 8, 24>}, {pipeline_mode = #tpu.pipeline_mode<synchronous>, transform_indices = @transform_5, window_bounds = array<i64: 8, 4>}, {pipeline_mode = #tpu.pipeline_mode<synchronous>, transform_indices = @transform_6, window_bounds = array<i64: 8, 4>}, {transform_indices = @transform_7, window_bounds = array<i64: 4>}, {pipeline_mode = #tpu.pipeline_mode<synchronous>, transform_indices = @transform_8, window_bounds = array<i64: 8, 512>}]} {
    %c0 = arith.constant 0 : index
    %c0_0 = arith.constant 0 : index
    %0 = vector.load %arg1[%c0, %c0_0] : memref<4x512xf32, #tpu.memory_space<vmem>>, vector<4x512xf32>
    %c0_1 = arith.constant 0 : index
    %c0_2 = arith.constant 0 : index
    %1 = vector.load %arg2[%c0_1, %c0_2] : memref<8x4xf32, #tpu.memory_space<vmem>>, vector<8x4xf32>
    %cst = arith.constant dense<0.000000e+00> : vector<8x512xf32>
    %2 = tpu.matmul %1, %0, %cst {dimension_numbers = #tpu.dot_dimension_numbers<[1], [0], [0], [1], [0, 0, 1, 1], [], []>} : vector<8x4xf32>, vector<4x512xf32>, vector<8x512xf32> -> vector<8x512xf32>
    %cst_3 = arith.constant dense<0.000000e+00> : vector<8xf32>
    %3 = vector.multi_reduction <add>, %2, %cst_3 [1] : vector<8x512xf32> to vector<8xf32>
    %4 = vector.shape_cast %3 : vector<8xf32> to vector<8x1xf32>
    %5 = arith.mulf %2, %2 : vector<8x512xf32>
    %cst_4 = arith.constant dense<0.000000e+00> : vector<8xf32>
    %6 = vector.multi_reduction <add>, %5, %cst_4 [1] : vector<8x512xf32> to vector<8xf32>
    %7 = vector.shape_cast %6 : vector<8xf32> to vector<8x1xf32>
    %cst_5 = arith.constant 0.001953125 : f32
    %8 = vector.broadcast %cst_5 : f32 to vector<8x1xf32>
    %9 = arith.mulf %4, %8 : vector<8x1xf32>
    %cst_6 = arith.constant 0.001953125 : f32
    %10 = vector.broadcast %cst_6 : f32 to vector<8x1xf32>
    %11 = arith.mulf %7, %10 : vector<8x1xf32>
    %12 = arith.mulf %9, %9 : vector<8x1xf32>
    %13 = arith.subf %11, %12 : vector<8x1xf32>
    %cst_7 = arith.constant 0.000000e+00 : f32
    %14 = vector.broadcast %cst_7 : f32 to vector<8x1xf32>
    %15 = arith.maximumf %13, %14 : vector<8x1xf32>
    %c0_8 = arith.constant 0 : index
    %c0_9 = arith.constant 0 : index
    %16 = vector.load %arg6[%c0_8, %c0_9] : memref<8x4xf32, #tpu.memory_space<vmem>>, vector<8x1xf32>
    %cst_10 = arith.constant 9.99999974E-6 : f32
    %17 = vector.broadcast %cst_10 : f32 to vector<8x1xf32>
    %18 = arith.addf %15, %17 : vector<8x1xf32>
    %19 = math.rsqrt %18 : vector<8x1xf32>
    %20 = arith.mulf %16, %19 : vector<8x1xf32>
    %c0_11 = arith.constant 0 : index
    %c0_12 = arith.constant 0 : index
    %21 = vector.load %arg7[%c0_11, %c0_12] : memref<8x4xf32, #tpu.memory_space<vmem>>, vector<8x1xf32>
    %22 = arith.mulf %9, %20 : vector<8x1xf32>
    %23 = arith.subf %21, %22 : vector<8x1xf32>
    %24 = vector.broadcast %20 : vector<8x1xf32> to vector<8x512xf32>
    %25 = arith.mulf %2, %24 : vector<8x512xf32>
    %26 = vector.broadcast %23 : vector<8x1xf32> to vector<8x512xf32>
    %27 = arith.addf %25, %26 : vector<8x512xf32>
    %c0_13 = arith.constant 0 : index
    %28 = memref.load %arg8[%c0_13] : memref<4xf32, #tpu.memory_space<smem>>
    %cst_14 = arith.constant 0.000000e+00 : f32
    %29 = vector.broadcast %cst_14 : f32 to vector<8x512xf32>
    %30 = arith.cmpf ogt, %27, %29 : vector<8x512xf32>
    %31 = vector.broadcast %28 : f32 to vector<8x512xf32>
    %32 = arith.mulf %31, %27 : vector<8x512xf32>
    %33 = arith.select %30, %27, %32 : vector<8x512xi1>, vector<8x512xf32>
    %c0_15 = arith.constant 0 : index
    %c0_16 = arith.constant 0 : index
    %34 = vector.load %arg3[%c0_15, %c0_16] : memref<8x8xf32, #tpu.memory_space<vmem>>, vector<8x8xf32>
    %cst_17 = arith.constant dense<0.000000e+00> : vector<8x512xf32>
    %35 = tpu.matmul %34, %33, %cst_17 {dimension_numbers = #tpu.dot_dimension_numbers<[1], [0], [0], [1], [0, 0, 1, 1], [], []>} : vector<8x8xf32>, vector<8x512xf32>, vector<8x512xf32> -> vector<8x512xf32>
    %cst_18 = arith.constant dense<0.000000e+00> : vector<8xf32>
    %36 = vector.multi_reduction <add>, %35, %cst_18 [1] : vector<8x512xf32> to vector<8xf32>
    %37 = vector.shape_cast %36 : vector<8xf32> to vector<8x1xf32>
    %38 = arith.mulf %35, %35 : vector<8x512xf32>
    %cst_19 = arith.constant dense<0.000000e+00> : vector<8xf32>
    %39 = vector.multi_reduction <add>, %38, %cst_19 [1] : vector<8x512xf32> to vector<8xf32>
    %40 = vector.shape_cast %39 : vector<8xf32> to vector<8x1xf32>
    %cst_20 = arith.constant 0.001953125 : f32
    %41 = vector.broadcast %cst_20 : f32 to vector<8x1xf32>
    %42 = arith.mulf %37, %41 : vector<8x1xf32>
    %cst_21 = arith.constant 0.001953125 : f32
    %43 = vector.broadcast %cst_21 : f32 to vector<8x1xf32>
    %44 = arith.mulf %40, %43 : vector<8x1xf32>
    %45 = arith.mulf %42, %42 : vector<8x1xf32>
    %46 = arith.subf %44, %45 : vector<8x1xf32>
    %cst_22 = arith.constant 0.000000e+00 : f32
    %47 = vector.broadcast %cst_22 : f32 to vector<8x1xf32>
    %48 = arith.maximumf %46, %47 : vector<8x1xf32>
    %c0_23 = arith.constant 0 : index
    %c1 = arith.constant 1 : index
    %49 = vector.load %arg6[%c0_23, %c1] : memref<8x4xf32, #tpu.memory_space<vmem>>, vector<8x1xf32>
    %cst_24 = arith.constant 9.99999974E-6 : f32
    %50 = vector.broadcast %cst_24 : f32 to vector<8x1xf32>
    %51 = arith.addf %48, %50 : vector<8x1xf32>
    %52 = math.rsqrt %51 : vector<8x1xf32>
    %53 = arith.mulf %49, %52 : vector<8x1xf32>
    %c0_25 = arith.constant 0 : index
    %c1_26 = arith.constant 1 : index
    %54 = vector.load %arg7[%c0_25, %c1_26] : memref<8x4xf32, #tpu.memory_space<vmem>>, vector<8x1xf32>
    %55 = arith.mulf %42, %53 : vector<8x1xf32>
    %56 = arith.subf %54, %55 : vector<8x1xf32>
    %57 = vector.broadcast %53 : vector<8x1xf32> to vector<8x512xf32>
    %58 = arith.mulf %35, %57 : vector<8x512xf32>
    %59 = vector.broadcast %56 : vector<8x1xf32> to vector<8x512xf32>
    %60 = arith.addf %58, %59 : vector<8x512xf32>
    %c1_27 = arith.constant 1 : index
    %61 = memref.load %arg8[%c1_27] : memref<4xf32, #tpu.memory_space<smem>>
    %cst_28 = arith.constant 0.000000e+00 : f32
    %62 = vector.broadcast %cst_28 : f32 to vector<8x512xf32>
    %63 = arith.cmpf ogt, %60, %62 : vector<8x512xf32>
    %64 = vector.broadcast %61 : f32 to vector<8x512xf32>
    %65 = arith.mulf %64, %60 : vector<8x512xf32>
    %66 = arith.select %63, %60, %65 : vector<8x512xi1>, vector<8x512xf32>
    %c0_29 = arith.constant 0 : index
    %c0_30 = arith.constant 0 : index
    %67 = vector.load %arg4[%c0_29, %c0_30] : memref<8x16xf32, #tpu.memory_space<vmem>>, vector<8x16xf32>
    %68 = vector.extract_strided_slice %67 {offsets = [0, 0], sizes = [8, 8], strides = [1, 1]} : vector<8x16xf32> to vector<8x8xf32>
    %cst_31 = arith.constant dense<0.000000e+00> : vector<8x512xf32>
    %69 = tpu.matmul %68, %33, %cst_31 {dimension_numbers = #tpu.dot_dimension_numbers<[1], [0], [0], [1], [0, 0, 1, 1], [], []>} : vector<8x8xf32>, vector<8x512xf32>, vector<8x512xf32> -> vector<8x512xf32>
    %70 = vector.extract_strided_slice %67 {offsets = [0, 8], sizes = [8, 8], strides = [1, 1]} : vector<8x16xf32> to vector<8x8xf32>
    %cst_32 = arith.constant dense<0.000000e+00> : vector<8x512xf32>
    %71 = tpu.matmul %70, %66, %cst_32 {dimension_numbers = #tpu.dot_dimension_numbers<[1], [0], [0], [1], [0, 0, 1, 1], [], []>} : vector<8x8xf32>, vector<8x512xf32>, vector<8x512xf32> -> vector<8x512xf32>
    %72 = arith.addf %69, %71 : vector<8x512xf32>
    %cst_33 = arith.constant dense<0.000000e+00> : vector<8xf32>
    %73 = vector.multi_reduction <add>, %72, %cst_33 [1] : vector<8x512xf32> to vector<8xf32>
    %74 = vector.shape_cast %73 : vector<8xf32> to vector<8x1xf32>
    %75 = arith.mulf %72, %72 : vector<8x512xf32>
    %cst_34 = arith.constant dense<0.000000e+00> : vector<8xf32>
    %76 = vector.multi_reduction <add>, %75, %cst_34 [1] : vector<8x512xf32> to vector<8xf32>
    %77 = vector.shape_cast %76 : vector<8xf32> to vector<8x1xf32>
    %cst_35 = arith.constant 0.001953125 : f32
    %78 = vector.broadcast %cst_35 : f32 to vector<8x1xf32>
    %79 = arith.mulf %74, %78 : vector<8x1xf32>
    %cst_36 = arith.constant 0.001953125 : f32
    %80 = vector.broadcast %cst_36 : f32 to vector<8x1xf32>
    %81 = arith.mulf %77, %80 : vector<8x1xf32>
    %82 = arith.mulf %79, %79 : vector<8x1xf32>
    %83 = arith.subf %81, %82 : vector<8x1xf32>
    %cst_37 = arith.constant 0.000000e+00 : f32
    %84 = vector.broadcast %cst_37 : f32 to vector<8x1xf32>
    %85 = arith.maximumf %83, %84 : vector<8x1xf32>
    %c0_38 = arith.constant 0 : index
    %c2 = arith.constant 2 : index
    %86 = vector.load %arg6[%c0_38, %c2] : memref<8x4xf32, #tpu.memory_space<vmem>>, vector<8x1xf32>
    %cst_39 = arith.constant 9.99999974E-6 : f32
    %87 = vector.broadcast %cst_39 : f32 to vector<8x1xf32>
    %88 = arith.addf %85, %87 : vector<8x1xf32>
    %89 = math.rsqrt %88 : vector<8x1xf32>
    %90 = arith.mulf %86, %89 : vector<8x1xf32>
    %c0_40 = arith.constant 0 : index
    %c2_41 = arith.constant 2 : index
    %91 = vector.load %arg7[%c0_40, %c2_41] : memref<8x4xf32, #tpu.memory_space<vmem>>, vector<8x1xf32>
    %92 = arith.mulf %79, %90 : vector<8x1xf32>
    %93 = arith.subf %91, %92 : vector<8x1xf32>
    %94 = vector.broadcast %90 : vector<8x1xf32> to vector<8x512xf32>
    %95 = arith.mulf %72, %94 : vector<8x512xf32>
    %96 = vector.broadcast %93 : vector<8x1xf32> to vector<8x512xf32>
    %97 = arith.addf %95, %96 : vector<8x512xf32>
    %c2_42 = arith.constant 2 : index
    %98 = memref.load %arg8[%c2_42] : memref<4xf32, #tpu.memory_space<smem>>
    %cst_43 = arith.constant 0.000000e+00 : f32
    %99 = vector.broadcast %cst_43 : f32 to vector<8x512xf32>
    %100 = arith.cmpf ogt, %97, %99 : vector<8x512xf32>
    %101 = vector.broadcast %98 : f32 to vector<8x512xf32>
    %102 = arith.mulf %101, %97 : vector<8x512xf32>
    %103 = arith.select %100, %97, %102 : vector<8x512xi1>, vector<8x512xf32>
    %c0_44 = arith.constant 0 : index
    %c0_45 = arith.constant 0 : index
    %104 = vector.load %arg5[%c0_44, %c0_45] : memref<8x24xf32, #tpu.memory_space<vmem>>, vector<8x24xf32>
    %105 = vector.extract_strided_slice %104 {offsets = [0, 0], sizes = [8, 8], strides = [1, 1]} : vector<8x24xf32> to vector<8x8xf32>
    %cst_46 = arith.constant dense<0.000000e+00> : vector<8x512xf32>
    %106 = tpu.matmul %105, %33, %cst_46 {dimension_numbers = #tpu.dot_dimension_numbers<[1], [0], [0], [1], [0, 0, 1, 1], [], []>} : vector<8x8xf32>, vector<8x512xf32>, vector<8x512xf32> -> vector<8x512xf32>
    %107 = vector.extract_strided_slice %104 {offsets = [0, 8], sizes = [8, 8], strides = [1, 1]} : vector<8x24xf32> to vector<8x8xf32>
    %cst_47 = arith.constant dense<0.000000e+00> : vector<8x512xf32>
    %108 = tpu.matmul %107, %66, %cst_47 {dimension_numbers = #tpu.dot_dimension_numbers<[1], [0], [0], [1], [0, 0, 1, 1], [], []>} : vector<8x8xf32>, vector<8x512xf32>, vector<8x512xf32> -> vector<8x512xf32>
    %109 = arith.addf %106, %108 : vector<8x512xf32>
    %110 = vector.extract_strided_slice %104 {offsets = [0, 16], sizes = [8, 8], strides = [1, 1]} : vector<8x24xf32> to vector<8x8xf32>
    %cst_48 = arith.constant dense<0.000000e+00> : vector<8x512xf32>
    %111 = tpu.matmul %110, %103, %cst_48 {dimension_numbers = #tpu.dot_dimension_numbers<[1], [0], [0], [1], [0, 0, 1, 1], [], []>} : vector<8x8xf32>, vector<8x512xf32>, vector<8x512xf32> -> vector<8x512xf32>
    %112 = arith.addf %109, %111 : vector<8x512xf32>
    %cst_49 = arith.constant dense<0.000000e+00> : vector<8xf32>
    %113 = vector.multi_reduction <add>, %112, %cst_49 [1] : vector<8x512xf32> to vector<8xf32>
    %114 = vector.shape_cast %113 : vector<8xf32> to vector<8x1xf32>
    %115 = arith.mulf %112, %112 : vector<8x512xf32>
    %cst_50 = arith.constant dense<0.000000e+00> : vector<8xf32>
    %116 = vector.multi_reduction <add>, %115, %cst_50 [1] : vector<8x512xf32> to vector<8xf32>
    %117 = vector.shape_cast %116 : vector<8xf32> to vector<8x1xf32>
    %cst_51 = arith.constant 0.001953125 : f32
    %118 = vector.broadcast %cst_51 : f32 to vector<8x1xf32>
    %119 = arith.mulf %114, %118 : vector<8x1xf32>
    %cst_52 = arith.constant 0.001953125 : f32
    %120 = vector.broadcast %cst_52 : f32 to vector<8x1xf32>
    %121 = arith.mulf %117, %120 : vector<8x1xf32>
    %122 = arith.mulf %119, %119 : vector<8x1xf32>
    %123 = arith.subf %121, %122 : vector<8x1xf32>
    %cst_53 = arith.constant 0.000000e+00 : f32
    %124 = vector.broadcast %cst_53 : f32 to vector<8x1xf32>
    %125 = arith.maximumf %123, %124 : vector<8x1xf32>
    %c0_54 = arith.constant 0 : index
    %c3 = arith.constant 3 : index
    %126 = vector.load %arg6[%c0_54, %c3] : memref<8x4xf32, #tpu.memory_space<vmem>>, vector<8x1xf32>
    %cst_55 = arith.constant 9.99999974E-6 : f32
    %127 = vector.broadcast %cst_55 : f32 to vector<8x1xf32>
    %128 = arith.addf %125, %127 : vector<8x1xf32>
    %129 = math.rsqrt %128 : vector<8x1xf32>
    %130 = arith.mulf %126, %129 : vector<8x1xf32>
    %c0_56 = arith.constant 0 : index
    %c3_57 = arith.constant 3 : index
    %131 = vector.load %arg7[%c0_56, %c3_57] : memref<8x4xf32, #tpu.memory_space<vmem>>, vector<8x1xf32>
    %132 = arith.mulf %119, %130 : vector<8x1xf32>
    %133 = arith.subf %131, %132 : vector<8x1xf32>
    %134 = vector.broadcast %130 : vector<8x1xf32> to vector<8x512xf32>
    %135 = arith.mulf %112, %134 : vector<8x512xf32>
    %136 = vector.broadcast %133 : vector<8x1xf32> to vector<8x512xf32>
    %137 = arith.addf %135, %136 : vector<8x512xf32>
    %c3_58 = arith.constant 3 : index
    %138 = memref.load %arg8[%c3_58] : memref<4xf32, #tpu.memory_space<smem>>
    %cst_59 = arith.constant 0.000000e+00 : f32
    %139 = vector.broadcast %cst_59 : f32 to vector<8x512xf32>
    %140 = arith.cmpf ogt, %137, %139 : vector<8x512xf32>
    %141 = vector.broadcast %138 : f32 to vector<8x512xf32>
    %142 = arith.mulf %141, %137 : vector<8x512xf32>
    %143 = arith.select %140, %137, %142 : vector<8x512xi1>, vector<8x512xf32>
    %c0_60 = arith.constant 0 : index
    %c0_61 = arith.constant 0 : index
    %144 = vector.load %arg9[%c0_60, %c0_61] : memref<8x512xf32, #tpu.memory_space<vmem>>, vector<8x512xf32>
    tpu.vector_store %arg9[%c0_60, %c0_61], %143 {strides = array<i32>} : memref<8x512xf32, #tpu.memory_space<vmem>>, vector<8x512xf32>,
    return
  }
  func.func @transform_0(%arg0: i32) -> (i32, i32) {
    %c0_i32 = arith.constant 0 : i32
    %c0_i32_0 = arith.constant 0 : i32
    %c0_i32_1 = arith.constant 0 : i32
    return %c0_i32, %c0_i32_0 : i32, i32
  }
  func.func @transform_1(%arg0: i32) -> (i32, i32) {
    %c0_i32 = arith.constant 0 : i32
    %c0_i32_0 = arith.constant 0 : i32
    %c0_i32_1 = arith.constant 0 : i32
    return %c0_i32, %c0_i32_0 : i32, i32
  }
  func.func @transform_2(%arg0: i32) -> (i32, i32) {
    %c0_i32 = arith.constant 0 : i32
    %c0_i32_0 = arith.constant 0 : i32
    %c0_i32_1 = arith.constant 0 : i32
    return %c0_i32, %c0_i32_0 : i32, i32
  }
  func.func @transform_3(%arg0: i32) -> (i32, i32) {
    %c0_i32 = arith.constant 0 : i32
    %c0_i32_0 = arith.constant 0 : i32
    %c0_i32_1 = arith.constant 0 : i32
    return %c0_i32, %c0_i32_0 : i32, i32
  }
  func.func @transform_4(%arg0: i32) -> (i32, i32) {
    %c0_i32 = arith.constant 0 : i32
    %c0_i32_0 = arith.constant 0 : i32
    %c0_i32_1 = arith.constant 0 : i32
    return %c0_i32, %c0_i32_0 : i32, i32
  }
  func.func @transform_5(%arg0: i32) -> (i32, i32) {
    %c0_i32 = arith.constant 0 : i32
    %c0_i32_0 = arith.constant 0 : i32
    %c0_i32_1 = arith.constant 0 : i32
    return %c0_i32, %c0_i32_0 : i32, i32
  }
  func.func @transform_6(%arg0: i32) -> (i32, i32) {
    %c0_i32 = arith.constant 0 : i32
    %c0_i32_0 = arith.constant 0 : i32
    %c0_i32_1 = arith.constant 0 : i32
    return %c0_i32, %c0_i32_0 : i32, i32
  }
  func.func @transform_7(%arg0: i32) -> i32 {
    %c0_i32 = arith.constant 0 : i32
    %c0_i32_0 = arith.constant 0 : i32
    return %c0_i32 : i32
  }
  func.func @transform_8(%arg0: i32) -> (i32, i32) {
    %c0_i32 = arith.constant 0 : i32
    %c0_i32_0 = arith.constant 0 : i32
    %c0_i32_1 = arith.constant 0 : i32
    return %c0_i32, %c0_i32_0 : i32, i32
  }
}

</mosaic_0001>

<bundles_post_ra>
// kernel: dense_block_forward.1
= control target key start
LH: loop header
LB: loop body
LE: loop exit
PB: predicated region body
PF: predicated region fallthrough
CT: control target
= control target key end

     0   :  { %13 = vsyncpa [#allocation3], 0  ;;  %s1532_s0 = inlined_call_operand.vmem [shape: f32[4,512], index: 0, kind: input, shape index: {}]   ;;  %s1533_s1 = inlined_call_operand.vmem [shape: f32[8,4], index: 1, kind: input, shape index: {}]   ;;  %s1534_s2 = inlined_call_operand.vmem [shape: f32[8,8], index: 2, kind: input, shape index: {}]   ;;  %s1535_s3 = inlined_call_operand.vmem [shape: f32[8,16], index: 3, kind: input, shape index: {}]   ;;  %s1536_s4 = inlined_call_operand.vmem [shape: f32[8,24], index: 4, kind: input, shape index: {}]   ;;  %s1537_s5 = inlined_call_operand.vmem [shape: f32[8,4], index: 5, kind: input, shape index: {}]   ;;  %s1538_s6 = inlined_call_operand.vmem [shape: f32[8,4], index: 6, kind: input, shape index: {}]   ;;  %s1539_s7 = inlined_call_operand.vmem [shape: f32[4], index: 7, kind: input, shape index: {}]   ;;  %s1540_s8 = inlined_call_operand.vmem [shape: f32[8,512], index: 8, kind: output, shape index: {}]  }
   0x1   :  { %s34_s29 = sshll.u32 %s1539_s7, 4  ;;  %s35_s29 = int_to_ptr.vmem [resolvable:$true] %s34_s29 }
   0x2   :  { %s1366_s30 = scalar_lea.vmem %s35_s29, 16  ;;  %p1371_p1 = scmp.lt.s32.totalorder %s35_s29, %s35_s29 }
   0x3   :  { %p1367_p0 = scmp.ne.s32.totalorder %s35_s29, %s1366_s30  ;;  %p1372_p2 = scmp.lt.s32.totalorder %s1366_s30, %s1366_s30 }
   0x5   :  { %p1373_p3 = por %p1372_p2, %p1371_p1 }
   0x7   :  { %p1374_p4 = pnand %p1373_p3, %p1367_p0 }
   0x9   :  { %1377 = shalt.err (!%p1374_p4)
}
   0xa   :  { %s1380_s9 = smov [#allocation2]  }
   0xb   :  { %37 = dma.vmem_to_smem %s35_s29, 16, %s1380_s9, [#allocation3]  }
   0xc   :  { %1378 = dma.done.wait [#allocation3], 16  }
   0xd   :  { %1379 = vsyncadd [#allocation3], 4294967280 }
   0xe   :  { %41 = sfence }
   0xf   :  { %v42_v0 = vld [vmem:[%s1532_s0] sm:$0xff]  ;;  %vm53_vm0 = vcmask 1043456   ;;  %v43_v1 = vld [vmem:[%s1532_s0 + $0x8] sm:$0xff]  ;;  %v1381_v3 = vmov 0.0   ;;  %vm49_vm1 = vcmask 31744   ;;  %v1382_v20 = vmov 0  }
  0x10   :  { %v47_v2 = vcombine.high %v42_v0, %v42_v0  ;;  %126 = vmatprep.mubr.f32.mxu0 %v1381_v3  ;;  %v48_v4 = vcombine.high %v43_v1, %v43_v1  ;;  %197 = vmatprep.mubr.f32.mxu1 %v1381_v3  ;;  %v44_v5 = vld [vmem:[%s1533_s1] sm:$0xff]  ;;  %s248_s17 = sld [smem:[#allocation2]]  ;;  %vm263_vm6 = vcmask 64512   ;;  %s1384_s19 = smov 120  }
  0x11   :  { %1349 = vset.pattern.permute.xlu1 %v1382_v20  ;;  %v1452_v29 = vld [vmem:[%s1537_s5] sm:$0xff]  ;;  %s1328_s20 = sld [smem:[#allocation2 + $0x1]]  ;;  %s1386_s22 = smov 112  }
  0x12   :  { %1320 = vmatprep.subr.msk.mxu0 %vm53_vm0, %v47_v2  ;;  %1323 = vmatprep.subr.msk.mxu1 %vm53_vm0, %v48_v4  ;;  %v1458_v32 = vld [vmem:[%s1538_s6] sm:$0xff]  ;;  %s1333_s23 = sld [smem:[#allocation2 + $0x2]] }
  0x13   :  { %1321 = vmatpush1.msk.msra.mxu0 %vm53_vm0, %v42_v0  ;;  %1324 = vmatpush1.msk.msra.mxu1 %vm53_vm0, %v43_v1  ;;  %v262_v52 = vld [vmem:[%s1534_s2] sm:$0xff] }
  0x14   :  { %1322 = vmatmul.mubr.msk.f32.vlgmr.msra.gmra.mxu0 %vm49_vm1, %v44_v5  ;;  %1325 = vmatmul.mubr.msk.f32.vlgmr.msra.gmra.mxu1 %vm49_vm1, %v44_v5 }
  0x15   :  { %331 = vmatprep.mubr.f32.mxu0 %v1381_v3  ;;  %402 = vmatprep.mubr.f32.mxu1 %v1381_v3 }
  0x16   :  { %v253_v41 = vstv %s248_s17 }
  0xd4   :  { %v128_v6 = vpop.f32.mrf.mxu0  ;;  %v199_v8 = vpop.f32.mrf.mxu1 }
  0xd5   :  { %v209_v9 = vmul.f32 %v128_v6, %v128_v6  ;;  %v211_v12 = vmul.f32 %v199_v8, %v199_v8 }
  0xd6   :  { %v130_v7 = vpop.f32.mrf.mxu0  ;;  %v201_v15 = vpop.f32.mrf.mxu1 }
  0xd7   :  { %v204_v10 = vadd.f32 %v130_v7, %v128_v6  ;;  %v210_v11 = vmul.f32 %v130_v7, %v130_v7  ;;  %v212_v18 = vmul.f32 %v201_v15, %v201_v15 }
  0xd9   :  { %v205_v13 = vadd.f32 %v204_v10, %v199_v8  ;;  %v213_v14 = vadd.f32 %v210_v11, %v209_v9 }
  0xdb   :  { %v206_v16 = vadd.f32 %v205_v13, %v201_v15  ;;  %v214_v17 = vadd.f32 %v213_v14, %v211_v12 }
  0xdd   :  { %207 = vadd.xlane.f32.xlu0 %v206_v16  ;;  %v215_v19 = vadd.f32 %v214_v17, %v212_v18  ;;  %v465_v18 = vld [vmem:[%s1535_s3] sm:$0xff] }
  0xe1   :  { %216 = vadd.xlane.f32.xlu0 %v215_v19 }
 0x166   :  { %v208_v21 = vpop.xlane.xlu0 %207 }
 0x167   :  { %v218_v22 = vmul.f32 0.001953125, %v208_v21 }
 0x169   :  { %v220_v24 = vmul.f32 %v218_v22, %v218_v22 }
 0x16a   :  { %v217_v23 = vpop.xlane.xlu0 %216 }
 0x16b   :  { %v219_v25 = vmul.f32 0.001953125, %v217_v23 }
 0x16d   :  { %v221_v26 = vsub.f32 %v219_v25, %v220_v24 }
 0x16f   :  { %v222_v27 = vmax.f32 %v221_v26, 0.0  ;;  %v456_v26 = vstv %s1328_s20 }
 0x171   :  { %v224_v28 = vadd.f32 1e-05, %v222_v27 }
 0x173   :  { %1358 = vrsqrt.f32 %v224_v28 }
 0x180   :  { %v1359_v30 = vpop.eup %1358 }
 0x181   :  { %v226_v31 = vmul.f32 %v1359_v30, %v1452_v29 }
 0x183   :  { %232 = vperm.xlu1 %1349, %v226_v31   ;;  %v228_v33 = vmul.f32 %v226_v31, %v218_v22 }
 0x185   :  { %v229_v34 = vsub.f32 %v1458_v32, %v228_v33 }
 0x187   :  { %241 = vperm.xlu1 %1349, %v229_v34  }
 0x1fe   :  { %v233_v35 = vpop.permute.xlu1 %232 }
 0x1ff   :  { %v235_v36 = vmul.f32 %v233_v35, %v128_v6  ;;  %v236_v37 = vmul.f32 %v233_v35, %v130_v7  ;;  %v237_v38 = vmul.f32 %v233_v35, %v199_v8  ;;  %v238_v39 = vmul.f32 %v233_v35, %v201_v15 }
 0x200   :  { %v1383_v6 = vmov 1  }
 0x201   :  { %1350 = vset.pattern.permute.xlu0 %v1383_v6  ;;  %1351 = vset.pattern.permute.xlu1 %v1383_v6 }
 0x202   :  { %v242_v40 = vpop.permute.xlu1 %241 }
 0x203   :  { %v244_v42 = vadd.f32 %v242_v40, %v235_v36  ;;  %v245_v43 = vadd.f32 %v242_v40, %v236_v37  ;;  %v246_v44 = vadd.f32 %v242_v40, %v237_v38  ;;  %v247_v45 = vadd.f32 %v242_v40, %v238_v39 }
 0x205   :  { %vm250_vm2 = vcmp.gt.f32.partialorder %v245_v43, 0.0  ;;  %v255_v46 = vmul.f32 %v253_v41, %v245_v43  ;;  %vm252_vm3 = vcmp.gt.f32.partialorder %v247_v45, 0.0  ;;  %v257_v47 = vmul.f32 %v253_v41, %v247_v45 }
 0x206   :  { %vm249_vm4 = vcmp.gt.f32.partialorder %v244_v42, 0.0  ;;  %v254_v48 = vmul.f32 %v253_v41, %v244_v42  ;;  %vm251_vm5 = vcmp.gt.f32.partialorder %v246_v44, 0.0  ;;  %v256_v49 = vmul.f32 %v253_v41, %v246_v44 }
 0x207   :  { %v1461_v50 = vsel %vm250_vm2, %v245_v43, %v255_v46  ;;  %v1463_v51 = vsel %vm252_vm3, %v247_v45, %v257_v47 }
 0x208   :  { %297 = vmatprep.subr.mxu0 %v1461_v50  ;;  %368 = vmatprep.subr.mxu1 %v1463_v51  ;;  %v1470_v53 = vsel %vm249_vm4, %v244_v42, %v254_v48  ;;  %v1472_v54 = vsel %vm251_vm5, %v246_v44, %v256_v49 }
 0x209   :  { %298 = vmatpush1.msra.mxu0 %v1470_v53  ;;  %369 = vmatpush1.msra.mxu1 %v1472_v54 }
 0x20a   :  { %1326 = vmatmul.mubr.msk.f32.vlgmr.msra.gmra.mxu0 %vm263_vm6, %v262_v52  ;;  %1327 = vmatmul.mubr.msk.f32.vlgmr.msra.gmra.mxu1 %vm263_vm6, %v262_v52 }
 0x20b   :  { %535 = vmatprep.mubr.f32.mxu0 %v1381_v3  ;;  %606 = vmatprep.mubr.f32.mxu1 %v1381_v3 }
 0x2ca   :  { %v333_v55 = vpop.f32.mrf.mxu0  ;;  %v404_v56 = vpop.f32.mrf.mxu1 }
 0x2cb   :  { %v414_v58 = vmul.f32 %v333_v55, %v333_v55  ;;  %v416_v61 = vmul.f32 %v404_v56, %v404_v56 }
 0x2cc   :  { %v335_v57 = vpop.f32.mrf.mxu0  ;;  %v406_v62 = vpop.f32.mrf.mxu1 }
 0x2cd   :  { %v409_v59 = vadd.f32 %v335_v57, %v333_v55  ;;  %v415_v60 = vmul.f32 %v335_v57, %v335_v57  ;;  %v417_v2 = vmul.f32 %v406_v62, %v406_v62 }
 0x2cf   :  { %v410_v63 = vadd.f32 %v409_v59, %v404_v56  ;;  %v418_v0 = vadd.f32 %v415_v60, %v414_v58 }
 0x2d1   :  { %v411_v1 = vadd.f32 %v410_v63, %v406_v62  ;;  %v419_v4 = vadd.f32 %v418_v0, %v416_v61 }
 0x2d3   :  { %412 = vadd.xlane.f32.xlu0 %v411_v1  ;;  %v420_v5 = vadd.f32 %v419_v4, %v417_v2  ;;  %v1385_v2 = vmov 2  }
 0x2d5   :  { %421 = vadd.xlane.f32.xlu1 %v420_v5 }
 0x35c   :  { %v413_v7 = vpop.xlane.xlu0 %412 }
 0x35d   :  { %v423_v8 = vmul.f32 0.001953125, %v413_v7 }
 0x35e   :  { %v422_v9 = vpop.xlane.xlu1 %421 }
 0x35f   :  { %v425_v10 = vmul.f32 %v423_v8, %v423_v8  ;;  %v424_v11 = vmul.f32 0.001953125, %v422_v9 }
 0x361   :  { %v426_v12 = vsub.f32 %v424_v11, %v425_v10 }
 0x363   :  { %v427_v13 = vmax.f32 %v426_v12, 0.0 }
 0x365   :  { %v428_v14 = vadd.f32 1e-05, %v427_v13 }
 0x367   :  { %1360 = vrsqrt.f32 %v428_v14 }
 0x374   :  { %v1361_v15 = vpop.eup %1360 }
 0x375   :  { %v430_v16 = vmul.f32 %v1361_v15, %v1452_v29 }
 0x377   :  { %435 = vperm.xlu0 %1350, %v430_v16   ;;  %v431_v17 = vmul.f32 %v430_v16, %v423_v8  ;;  %v813_v16 = vld [vmem:[%s1536_s4] sm:$0xff]  ;;  %s1340_s4 = sld [smem:[#allocation2 + $0x3]] }
 0x379   :  { %v432_v19 = vsub.f32 %v1458_v32, %v431_v17 }
 0x37b   :  { %444 = vperm.xlu1 %1351, %v432_v19   ;;  %467 = vrot.lane.b32.xlu0 %v465_v18, %s1384_s19 }
 0x37c   :  { %1352 = vset.pattern.permute.xlu0 %v1385_v2 }
 0x37f   :  { %1353 = vset.pattern.permute.xlu1 %v1385_v2 }
 0x3f2   :  { %v436_v20 = vpop.permute.xlu0 %435 }
 0x3f3   :  { %v438_v21 = vmul.f32 %v436_v20, %v333_v55  ;;  %v439_v22 = vmul.f32 %v436_v20, %v335_v57  ;;  %v440_v23 = vmul.f32 %v436_v20, %v404_v56  ;;  %v441_v24 = vmul.f32 %v436_v20, %v406_v62 }
 0x3f6   :  { %v445_v25 = vpop.permute.xlu1 %444  ;;  %v468_v39 = vpop.permute.xlu0 %467 }
 0x3f7   :  { %v447_v27 = vadd.f32 %v445_v25, %v438_v21  ;;  %v448_v28 = vadd.f32 %v445_v25, %v439_v22  ;;  %v449_v30 = vadd.f32 %v445_v25, %v440_v23  ;;  %v450_v31 = vadd.f32 %v445_v25, %v441_v24 }
 0x3f8   :  { %v804_v23 = vstv %s1333_s23 }
 0x3f9   :  { %vm453_vm7 = vcmp.gt.f32.partialorder %v448_v28, 0.0  ;;  %v458_v33 = vmul.f32 %v456_v26, %v448_v28  ;;  %vm455_vm8 = vcmp.gt.f32.partialorder %v450_v31, 0.0  ;;  %v460_v34 = vmul.f32 %v456_v26, %v450_v31 }
 0x3fa   :  { %vm452_vm9 = vcmp.gt.f32.partialorder %v447_v27, 0.0  ;;  %v457_v35 = vmul.f32 %v456_v26, %v447_v27  ;;  %vm454_vm10 = vcmp.gt.f32.partialorder %v449_v30, 0.0  ;;  %v459_v36 = vmul.f32 %v456_v26, %v449_v30 }
 0x3fb   :  { %v462_v37 = vsel %vm453_vm7, %v448_v28, %v458_v33  ;;  %v464_v38 = vsel %vm455_vm8, %v450_v31, %v460_v34 }
 0x3fc   :  { %501 = vmatprep.subr.mxu0 %v462_v37  ;;  %572 = vmatprep.subr.mxu1 %v464_v38  ;;  %v461_v40 = vsel %vm452_vm9, %v447_v27, %v457_v35  ;;  %v463_v41 = vsel %vm454_vm10, %v449_v30, %v459_v36 }
 0x3fd   :  { %502 = vmatpush1.msra.mxu0 %v461_v40  ;;  %573 = vmatpush1.msra.mxu1 %v463_v41 }
 0x3fe   :  { %1329 = vmatmul.mubr.msk.f32.vlgmr.msra.gmra.mxu0 %vm263_vm6, %v468_v39  ;;  %1330 = vmatmul.mubr.msk.f32.vlgmr.msra.gmra.mxu1 %vm263_vm6, %v468_v39 }
 0x3ff   :  { %645 = vmatprep.subr.mxu0 %v1461_v50  ;;  %716 = vmatprep.subr.mxu1 %v1463_v51 }
 0x400   :  { %646 = vmatpush1.msra.mxu0 %v1470_v53  ;;  %717 = vmatpush1.msra.mxu1 %v1472_v54 }
 0x401   :  { %849 = vmatprep.subr.mxu0 %v462_v37  ;;  %920 = vmatprep.subr.mxu1 %v464_v38 }
 0x402   :  { %679 = vmatprep.mubr.f32.mxu0 %v1381_v3  ;;  %750 = vmatprep.mubr.f32.mxu1 %v1381_v3 }
 0x403   :  { %1331 = vmatmul.mubr.msk.f32.vlgmr.msra.gmra.mxu0 %vm263_vm6, %v465_v18  ;;  %1332 = vmatmul.mubr.msk.f32.vlgmr.msra.gmra.mxu1 %vm263_vm6, %v465_v18 }
 0x404   :  { %850 = vmatpush1.msra.mxu0 %v461_v40  ;;  %921 = vmatpush1.msra.mxu1 %v463_v41 }
 0x405   :  { %993 = vmatprep.subr.mxu0 %v1461_v50  ;;  %1064 = vmatprep.subr.mxu1 %v1463_v51 }
 0x406   :  { %883 = vmatprep.mubr.f32.mxu0 %v1381_v3  ;;  %954 = vmatprep.mubr.f32.mxu1 %v1381_v3 }
 0x4be   :  { %v537_v42 = vpop.f32.mrf.mxu0  ;;  %v608_v43 = vpop.f32.mrf.mxu1 }
 0x4c0   :  { %v539_v44 = vpop.f32.mrf.mxu0  ;;  %v610_v45 = vpop.f32.mrf.mxu1 }
 0x4c3   :  { %v681_v46 = vpop.f32.mrf.mxu0  ;;  %v752_v47 = vpop.f32.mrf.mxu1 }
 0x4c4   :  { %v682_v48 = vadd.f32 %v681_v46, %v537_v42  ;;  %v753_v55 = vadd.f32 %v752_v47, %v608_v43 }
 0x4c5   :  { %v683_v49 = vpop.f32.mrf.mxu0  ;;  %v754_v52 = vpop.f32.mrf.mxu1 }
 0x4c6   :  { %v684_v56 = vadd.f32 %v683_v49, %v539_v44  ;;  %v762_v57 = vmul.f32 %v682_v48, %v682_v48  ;;  %v755_v59 = vadd.f32 %v754_v52, %v610_v45  ;;  %v764_v51 = vmul.f32 %v753_v55, %v753_v55 }
 0x4c8   :  { %v757_v58 = vadd.f32 %v684_v56, %v682_v48  ;;  %v763_v50 = vmul.f32 %v684_v56, %v684_v56  ;;  %v765_v63 = vmul.f32 %v755_v59, %v755_v59 }
 0x4ca   :  { %v758_v60 = vadd.f32 %v757_v58, %v753_v55  ;;  %v766_v61 = vadd.f32 %v763_v50, %v762_v57 }
 0x4cc   :  { %v759_v62 = vadd.f32 %v758_v60, %v755_v59  ;;  %v767_v0 = vadd.f32 %v766_v61, %v764_v51 }
 0x4ce   :  { %760 = vadd.xlane.f32.xlu0 %v759_v62  ;;  %v768_v1 = vadd.f32 %v767_v0, %v765_v63 }
 0x4d0   :  { %769 = vadd.xlane.f32.xlu1 %v768_v1 }
 0x557   :  { %v761_v4 = vpop.xlane.xlu0 %760 }
 0x558   :  { %v771_v5 = vmul.f32 0.001953125, %v761_v4 }
 0x559   :  { %v770_v6 = vpop.xlane.xlu1 %769 }
 0x55a   :  { %v773_v7 = vmul.f32 %v771_v5, %v771_v5  ;;  %v772_v8 = vmul.f32 0.001953125, %v770_v6  ;;  %v1387_v6 = vmov 3  }
 0x55c   :  { %v774_v9 = vsub.f32 %v772_v8, %v773_v7 }
 0x55e   :  { %v775_v10 = vmax.f32 %v774_v9, 0.0 }
 0x560   :  { %v776_v11 = vadd.f32 1e-05, %v775_v10 }
 0x562   :  { %1362 = vrsqrt.f32 %v776_v11 }
 0x56f   :  { %v1363_v12 = vpop.eup %1362 }
 0x570   :  { %v778_v13 = vmul.f32 %v1363_v12, %v1452_v29 }
 0x572   :  { %783 = vperm.xlu0 %1352, %v778_v13   ;;  %v779_v14 = vmul.f32 %v778_v13, %v771_v5 }
 0x574   :  { %v780_v15 = vsub.f32 %v1458_v32, %v779_v14 }
 0x576   :  { %792 = vperm.xlu1 %1353, %v780_v15   ;;  %1355 = vset.pattern.permute.xlu0 %v1387_v6 }
 0x57a   :  { %815 = vrot.lane.b32.xlu1 %v813_v16, %s1384_s19 }
 0x57b   :  { %1354 = vset.pattern.permute.xlu1 %v1387_v6 }
 0x57e   :  { %1105 = vrot.lane.b32.xlu1 %v813_v16, %s1386_s22 }
 0x5ed   :  { %v784_v17 = vpop.permute.xlu0 %783 }
 0x5ee   :  { %v786_v18 = vmul.f32 %v784_v17, %v682_v48  ;;  %v787_v19 = vmul.f32 %v784_v17, %v684_v56  ;;  %v788_v20 = vmul.f32 %v784_v17, %v753_v55  ;;  %v789_v21 = vmul.f32 %v784_v17, %v755_v59 }
 0x5f1   :  { %v793_v22 = vpop.permute.xlu1 %792 }
 0x5f2   :  { %v795_v24 = vadd.f32 %v793_v22, %v786_v18  ;;  %v796_v25 = vadd.f32 %v793_v22, %v787_v19  ;;  %v797_v26 = vadd.f32 %v793_v22, %v788_v20  ;;  %v798_v27 = vadd.f32 %v793_v22, %v789_v21 }
 0x5f4   :  { %vm801_vm11 = vcmp.gt.f32.partialorder %v796_v25, 0.0  ;;  %v806_v28 = vmul.f32 %v804_v23, %v796_v25  ;;  %vm803_vm12 = vcmp.gt.f32.partialorder %v798_v27, 0.0  ;;  %v808_v30 = vmul.f32 %v804_v23, %v798_v27 }
 0x5f5   :  { %v816_v31 = vpop.permute.xlu1 %815  ;;  %v805_v33 = vmul.f32 %v804_v23, %v795_v24  ;;  %v807_v36 = vmul.f32 %v804_v23, %v797_v26  ;;  %vm800_vm13 = vcmp.gt.f32.partialorder %v795_v24, 0.0  ;;  %vm802_vm14 = vcmp.gt.f32.partialorder %v797_v26, 0.0 }
 0x5f6   :  { %1334 = vmatmul.mubr.msk.f32.vlgmr.msra.gmra.mxu0 %vm263_vm6, %v816_v31  ;;  %1335 = vmatmul.mubr.msk.f32.vlgmr.msra.gmra.mxu1 %vm263_vm6, %v816_v31  ;;  %v810_v34 = vsel %vm801_vm11, %v796_v25, %v806_v28  ;;  %v812_v35 = vsel %vm803_vm12, %v798_v27, %v808_v30 }
 0x5f7   :  { %994 = vmatpush1.msra.mxu0 %v1470_v53  ;;  %1065 = vmatpush1.msra.mxu1 %v1472_v54  ;;  %v809_v37 = vsel %vm800_vm13, %v795_v24, %v805_v33  ;;  %v811_v38 = vsel %vm802_vm14, %v797_v26, %v807_v36  ;;  %v1302_v24 = vstv %s1340_s4 }
 0x5f8   :  { %1139 = vmatprep.subr.mxu0 %v810_v34  ;;  %1210 = vmatprep.subr.mxu1 %v812_v35 }
 0x5f9   :  { %1027 = vmatprep.mubr.f32.mxu0 %v1381_v3  ;;  %1098 = vmatprep.mubr.f32.mxu1 %v1381_v3  ;;  %v1106_v39 = vpop.permute.xlu1 %1105 }
 0x5fa   :  { %1336 = vmatmul.mubr.msk.f32.vlgmr.msra.gmra.mxu0 %vm263_vm6, %v813_v16  ;;  %1337 = vmatmul.mubr.msk.f32.vlgmr.msra.gmra.mxu1 %vm263_vm6, %v813_v16 }
 0x5fb   :  { %1140 = vmatpush1.msra.mxu0 %v809_v37  ;;  %1211 = vmatpush1.msra.mxu1 %v811_v38 }
 0x5fc   :  { %1173 = vmatprep.mubr.f32.mxu0 %v1381_v3  ;;  %1244 = vmatprep.mubr.f32.mxu1 %v1381_v3 }
 0x5fe   :  { %1338 = vmatmul.mubr.msk.f32.vlgmr.msra.gmra.mxu0 %vm263_vm6, %v1106_v39  ;;  %1339 = vmatmul.mubr.msk.f32.vlgmr.msra.gmra.mxu1 %vm263_vm6, %v1106_v39 }
 0x6b6   :  { %v885_v53 = vpop.f32.mrf.mxu0  ;;  %v956_v54 = vpop.f32.mrf.mxu1 }
 0x6b8   :  { %v887_v40 = vpop.f32.mrf.mxu0  ;;  %v958_v41 = vpop.f32.mrf.mxu1 }
 0x6ba   :  { %v1029_v42 = vpop.f32.mrf.mxu0  ;;  %v1100_v43 = vpop.f32.mrf.mxu1 }
 0x6bb   :  { %v1030_v46 = vadd.f32 %v1029_v42, %v885_v53  ;;  %v1101_v49 = vadd.f32 %v1100_v43, %v956_v54 }
 0x6bc   :  { %v1031_v44 = vpop.f32.mrf.mxu0  ;;  %v1102_v45 = vpop.f32.mrf.mxu1 }
 0x6bd   :  { %v1032_v52 = vadd.f32 %v1031_v44, %v887_v40  ;;  %v1103_v57 = vadd.f32 %v1102_v45, %v958_v41 }
 0x6be   :  { %v1175_v47 = vpop.f32.mrf.mxu0  ;;  %v1246_v48 = vpop.f32.mrf.mxu1 }
 0x6bf   :  { %v1251_v55 = vadd.f32 %v1175_v47, %v1030_v46  ;;  %v1253_v58 = vadd.f32 %v1246_v48, %v1101_v49 }
 0x6c0   :  { %v1177_v56 = vpop.f32.mrf.mxu0  ;;  %v1248_v3 = vpop.f32.mrf.mxu1 }
 0x6c1   :  { %v1252_v50 = vadd.f32 %v1177_v56, %v1032_v52  ;;  %v1260_v59 = vmul.f32 %v1251_v55, %v1251_v55  ;;  %v1254_v61 = vadd.f32 %v1248_v3, %v1103_v57  ;;  %v1262_v62 = vmul.f32 %v1253_v58, %v1253_v58 }
 0x6c3   :  { %v1255_v51 = vadd.f32 %v1252_v50, %v1251_v55  ;;  %v1261_v60 = vmul.f32 %v1252_v50, %v1252_v50  ;;  %v1263_v2 = vmul.f32 %v1254_v61, %v1254_v61 }
 0x6c5   :  { %v1256_v63 = vadd.f32 %v1255_v51, %v1253_v58  ;;  %v1264_v0 = vadd.f32 %v1261_v60, %v1260_v59 }
 0x6c7   :  { %v1257_v1 = vadd.f32 %v1256_v63, %v1254_v61  ;;  %v1265_v4 = vadd.f32 %v1264_v0, %v1262_v62 }
 0x6c9   :  { %1258 = vadd.xlane.f32.xlu1 %v1257_v1  ;;  %v1266_v5 = vadd.f32 %v1265_v4, %v1263_v2 }
 0x6cb   :  { %1267 = vadd.xlane.f32.xlu0 %v1266_v5 }
 0x752   :  { %v1259_v7 = vpop.xlane.xlu1 %1258 }
 0x753   :  { %v1269_v8 = vmul.f32 0.001953125, %v1259_v7 }
 0x754   :  { %v1268_v9 = vpop.xlane.xlu0 %1267 }
 0x755   :  { %v1271_v10 = vmul.f32 %v1269_v8, %v1269_v8  ;;  %v1270_v11 = vmul.f32 0.001953125, %v1268_v9 }
 0x757   :  { %v1272_v12 = vsub.f32 %v1270_v11, %v1271_v10 }
 0x759   :  { %v1273_v13 = vmax.f32 %v1272_v12, 0.0 }
 0x75b   :  { %v1274_v14 = vadd.f32 1e-05, %v1273_v13 }
 0x75d   :  { %1364 = vrsqrt.f32 %v1274_v14 }
 0x76a   :  { %v1365_v15 = vpop.eup %1364 }
 0x76b   :  { %v1276_v16 = vmul.f32 %v1365_v15, %v1452_v29 }
 0x76d   :  { %1281 = vperm.xlu1 %1354, %v1276_v16   ;;  %v1277_v17 = vmul.f32 %v1276_v16, %v1269_v8 }
 0x76f   :  { %v1278_v18 = vsub.f32 %v1458_v32, %v1277_v17 }
 0x771   :  { %1290 = vperm.xlu0 %1355, %v1278_v18  }
 0x7e8   :  { %v1282_v19 = vpop.permute.xlu1 %1281 }
 0x7e9   :  { %v1284_v20 = vmul.f32 %v1282_v19, %v1251_v55  ;;  %v1285_v21 = vmul.f32 %v1282_v19, %v1252_v50  ;;  %v1286_v22 = vmul.f32 %v1282_v19, %v1253_v58  ;;  %v1287_v23 = vmul.f32 %v1282_v19, %v1254_v61 }
 0x7ec   :  { %v1291_v25 = vpop.permute.xlu0 %1290 }
 0x7ed   :  { %v1293_v26 = vadd.f32 %v1291_v25, %v1284_v20  ;;  %v1294_v27 = vadd.f32 %v1291_v25, %v1285_v21  ;;  %v1295_v28 = vadd.f32 %v1291_v25, %v1286_v22  ;;  %v1296_v30 = vadd.f32 %v1291_v25, %v1287_v23 }
 0x7ef   :  { %vm1298_vm15 = vcmp.gt.f32.partialorder %v1293_v26, 0.0  ;;  %vm1299_vm0 = vcmp.gt.f32.partialorder %v1294_v27, 0.0  ;;  %vm1300_vm1 = vcmp.gt.f32.partialorder %v1295_v28, 0.0  ;;  %vm1301_vm2 = vcmp.gt.f32.partialorder %v1296_v30, 0.0 }
 0x7f0   :  { %v1303_v29 = vmul.f32 %v1302_v24, %v1293_v26  ;;  %v1304_v31 = vmul.f32 %v1302_v24, %v1294_v27  ;;  %v1305_v32 = vmul.f32 %v1302_v24, %v1295_v28  ;;  %v1306_v33 = vmul.f32 %v1302_v24, %v1296_v30 }
 0x7f2   :  { %v1307_v34 = vsel %vm1298_vm15, %v1293_v26, %v1303_v29  ;;  %v1308_v35 = vsel %vm1299_vm0, %v1294_v27, %v1304_v31  ;;  %v1309_v36 = vsel %vm1300_vm1, %v1295_v28, %v1305_v32  ;;  %v1310_v37 = vsel %vm1301_vm2, %v1296_v30, %v1306_v33 }
 0x7f3   :  { %1311 = vst [vmem:[%s1540_s8] sm:$0xff] %v1307_v34  ;;  %1312 = vst [vmem:[%s1540_s8 + $0x8] sm:$0xff] %v1308_v35 }
 0x7f4   :  { %1313 = vst [vmem:[%s1540_s8 + $0x10] sm:$0xff] %v1309_v36  ;;  %1314 = vst [vmem:[%s1540_s8 + $0x18] sm:$0xff] %v1310_v37 }
 0x7f5   :  { %1319 = vsyncpa [#allocation3], 1 }

</bundles_post_ra>
